<compile_context>
chip_gen: v5e
topology: v5e:2x2
jax: 0.10.0
libtpu: 0.0.40
codegen_flags: <defaults>
</compile_context>

<pallas_src>
import functools

import jax
import jax.numpy as jnp
from jax.experimental import pallas as pl
from jax.experimental.pallas import tpu as pltpu


# --------------------------------------------------------------------------
# Kernel: one (batch, group-block) tile.
#   x_ref: (1, gpb, cg, HW)   activations, group-major, HW on lanes
#   w_ref: (1, gpb, 1)        per-group scale
#   b_ref: (1, gpb, 1)        per-group bias
#   o_ref: (1, gpb, cg, HW)
# --------------------------------------------------------------------------
def _sge_kernel(x_ref, w_ref, b_ref, o_ref, *, inv_hw, inv_hw_m1):
    x = x_ref[0].astype(jnp.float32)                          # (gpb, cg, HW)

    # AdaptiveAvgPool2d(1): per-channel spatial mean (lane reduction).
    ch_mean = jnp.sum(x, axis=-1, keepdims=True) * inv_hw     # (gpb, cg, 1)
    xn = x * ch_mean                                          # (gpb, cg, HW)

    # Sum over the channels of each group (sublane / XLU reduction).
    t = jnp.sum(xn, axis=1)                                   # (gpb, HW)

    # Standardize over the spatial dim; torch.std is unbiased (ddof=1).
    t_mean = jnp.sum(t, axis=-1, keepdims=True) * inv_hw      # (gpb, 1)
    tc = t - t_mean
    var = jnp.sum(tc * tc, axis=-1, keepdims=True) * inv_hw_m1
    inv_std = 1.0 / (jnp.sqrt(var) + 1e-5)                    # matches t / (std + 1e-5)

    # Per-group affine + sigmoid gate (sigmoid -> EUP slot).
    tt = tc * inv_std * w_ref[0] + b_ref[0]                   # (gpb, HW)
    gate = jax.nn.sigmoid(tt)

    # Broadcast the group gate over the group's channels (sublane broadcast).
    o_ref[0] = (x * gate[:, None, :]).astype(o_ref.dtype)


def _pick_groups_per_block(groups, cg, hw, itemsize, budget_bytes=2 << 20):
    """Largest divisor of `groups` whose input block fits the VMEM budget."""
    best = 1
    for g in range(1, groups + 1):
        if groups % g != 0:
            continue
        if g * cg * hw * itemsize <= budget_bytes:
            best = g
    return best


# --------------------------------------------------------------------------
# Wrapper
# --------------------------------------------------------------------------
def spatial_group_enhance(x_nchw, weight, bias, groups=8, groups_per_block=None):
    """SpatialGroupEnhance forward.

    x_nchw: (B, C, H, W); weight/bias: any shape with `groups` elements
    (the PyTorch module stores them as (1, groups, 1, 1)).
    """
    B, C, H, W = x_nchw.shape
    assert C % groups == 0, (C, groups)
    cg = C // groups
    HW = H * W

    if groups_per_block is None:
        gpb = _pick_groups_per_block(groups, cg, HW, jnp.dtype(x_nchw.dtype).itemsize)
    else:
        gpb = groups_per_block
    assert groups % gpb == 0, (groups, gpb)
    n_gblk = groups // gpb

    # Free, contiguous reshape in HBM (same as torch .view(b*groups, -1, h, w)),
    # with HW as the trailing (lane) dimension.
    xg = x_nchw.reshape(B, groups, cg, HW)
    wg = jnp.asarray(weight).reshape(n_gblk, gpb, 1).astype(jnp.float32)
    bg = jnp.asarray(bias).reshape(n_gblk, gpb, 1).astype(jnp.float32)

    kernel = functools.partial(
        _sge_kernel,
        inv_hw=1.0 / HW,
        inv_hw_m1=1.0 / max(HW - 1, 1),   # guard HW==1 (torch would give NaN)
    )

    out = pl.pallas_call(
        kernel,
        out_shape=jax.ShapeDtypeStruct((B, groups, cg, HW), x_nchw.dtype),
        grid=(B, n_gblk),
        in_specs=[
            pl.BlockSpec((1, gpb, cg, HW), lambda bi, gi: (bi, gi, 0, 0)),
            pl.BlockSpec((1, gpb, 1), lambda bi, gi: (gi, 0, 0)),
            pl.BlockSpec((1, gpb, 1), lambda bi, gi: (gi, 0, 0)),
        ],
        out_specs=pl.BlockSpec((1, gpb, cg, HW), lambda bi, gi: (bi, gi, 0, 0)),
        compiler_params=pltpu.CompilerParams(
            dimension_semantics=("parallel", "parallel"),
        ),
    )(xg, wg, bg)

    return out.reshape(B, C, H, W)


# --------------------------------------------------------------------------
# Pure-JAX reference (mirrors the PyTorch forward) for a correctness check.
# --------------------------------------------------------------------------
def sge_reference(x, weight, bias, groups=8):
    B, C, H, W = x.shape
    cg = C // groups
    xg = x.reshape(B * groups, cg, H * W).astype(jnp.float32)
    xn = xg * jnp.mean(xg, axis=-1, keepdims=True)
    t = jnp.sum(xn, axis=1)                                   # (B*G, HW)
    t = t - jnp.mean(t, axis=-1, keepdims=True)
    std = jnp.std(t, axis=-1, keepdims=True, ddof=1) + 1e-5
    t = t / std
    t = t.reshape(B, groups, H * W) * weight.reshape(1, groups, 1) \
        + bias.reshape(1, groups, 1)
    gate = jax.nn.sigmoid(t).reshape(B * groups, 1, H * W)
    return (xg * gate).reshape(B, C, H, W).astype(x.dtype)


if __name__ == "__main__":
    key = jax.random.PRNGKey(0)
    k1, k2, k3 = jax.random.split(key, 3)

    B, C, H, W = 2, 32, 16, 16          # C divisible by groups=8; HW=256 lanes
    groups = 8

    x = jax.random.normal(k1, (B, C, H, W), jnp.float32)
    # The module initializes weight/bias to zero (trivial 0.5 gate); use
    # nonzero values so the standardize/affine/sigmoid path is exercised.
    weight = 0.5 * jax.random.normal(k2, (1, groups, 1, 1), jnp.float32)
    bias = 0.1 * jax.random.normal(k3, (1, groups, 1, 1), jnp.float32)

    out = spatial_group_enhance(x, weight, bias, groups=groups)
    out = jax.block_until_ready(out)

    assert out.shape == (B, C, H, W), out.shape
    assert bool(jnp.all(jnp.isfinite(out)))

    ref = sge_reference(x, weight, bias, groups=groups)
    max_err = float(jnp.max(jnp.abs(out - ref)))
    assert max_err < 1e-4, max_err

    print("KERNEL_OK")
</pallas_src>

<mosaic_0001>
module attributes {stable_mosaic.version = 11 : i64} {
  func.func @_sge_kernel(%arg0: i32, %arg1: i32, %arg2: memref<1x8x4x256xf32, #tpu.memory_space<vmem>>, %arg3: memref<1x8x1xf32, #tpu.memory_space<vmem>>, %arg4: memref<1x8x1xf32, #tpu.memory_space<vmem>>, %arg5: memref<1x8x4x256xf32, #tpu.memory_space<vmem>>) attributes {dimension_semantics = [#tpu.dimension_semantics<parallel>, #tpu.dimension_semantics<parallel>], iteration_bounds = array<i64: 2, 1>, scalar_prefetch = 0 : i64, scratch_operands = 0 : i64, tpu.core_type = #tpu.core_type<tc>, window_params = [{transform_indices = @transform_0, window_bounds = array<i64: 1, 8, 4, 256>}, {transform_indices = @transform_1, window_bounds = array<i64: 1, 8, 1>}, {transform_indices = @transform_2, window_bounds = array<i64: 1, 8, 1>}, {transform_indices = @transform_3, window_bounds = array<i64: 1, 8, 4, 256>}]} {
    %c0 = arith.constant 0 : index
    %c0_0 = arith.constant 0 : index
    %c0_1 = arith.constant 0 : index
    %c0_2 = arith.constant 0 : index
    %0 = vector.load %arg2[%c0, %c0_0, %c0_1, %c0_2] : memref<1x8x4x256xf32, #tpu.memory_space<vmem>>, vector<1x8x4x256xf32>
    %1 = vector.shape_cast %0 : vector<1x8x4x256xf32> to vector<8x4x256xf32>
    %cst = arith.constant dense<0.000000e+00> : vector<8x4xf32>
    %2 = vector.multi_reduction <add>, %1, %cst [2] : vector<8x4x256xf32> to vector<8x4xf32>
    %3 = vector.shape_cast %2 : vector<8x4xf32> to vector<8x4x1xf32>
    %cst_3 = arith.constant 3.906250e-03 : f32
    %4 = vector.broadcast %cst_3 : f32 to vector<8x4x1xf32>
    %5 = arith.mulf %3, %4 : vector<8x4x1xf32>
    %6 = vector.broadcast %5 : vector<8x4x1xf32> to vector<8x4x256xf32>
    %7 = arith.mulf %1, %6 : vector<8x4x256xf32>
    %cst_4 = arith.constant dense<0.000000e+00> : vector<8x256xf32>
    %8 = vector.multi_reduction <add>, %7, %cst_4 [1] : vector<8x4x256xf32> to vector<8x256xf32>
    %cst_5 = arith.constant dense<0.000000e+00> : vector<8xf32>
    %9 = vector.multi_reduction <add>, %8, %cst_5 [1] : vector<8x256xf32> to vector<8xf32>
    %10 = vector.shape_cast %9 : vector<8xf32> to vector<8x1xf32>
    %cst_6 = arith.constant 3.906250e-03 : f32
    %11 = vector.broadcast %cst_6 : f32 to vector<8x1xf32>
    %12 = arith.mulf %10, %11 : vector<8x1xf32>
    %13 = vector.broadcast %12 : vector<8x1xf32> to vector<8x256xf32>
    %14 = arith.subf %8, %13 : vector<8x256xf32>
    %15 = arith.mulf %14, %14 : vector<8x256xf32>
    %cst_7 = arith.constant dense<0.000000e+00> : vector<8xf32>
    %16 = vector.multi_reduction <add>, %15, %cst_7 [1] : vector<8x256xf32> to vector<8xf32>
    %17 = vector.shape_cast %16 : vector<8xf32> to vector<8x1xf32>
    %cst_8 = arith.constant 0.00392156886 : f32
    %18 = vector.broadcast %cst_8 : f32 to vector<8x1xf32>
    %19 = arith.mulf %17, %18 : vector<8x1xf32>
    %20 = math.sqrt %19 : vector<8x1xf32>
    %cst_9 = arith.constant 9.99999974E-6 : f32
    %21 = vector.broadcast %cst_9 : f32 to vector<8x1xf32>
    %22 = arith.addf %20, %21 : vector<8x1xf32>
    %cst_10 = arith.constant 1.000000e+00 : f32
    %23 = vector.broadcast %cst_10 : f32 to vector<8x1xf32>
    %24 = arith.divf %23, %22 : vector<8x1xf32>
    %25 = vector.broadcast %24 : vector<8x1xf32> to vector<8x256xf32>
    %26 = arith.mulf %14, %25 : vector<8x256xf32>
    %c0_11 = arith.constant 0 : index
    %c0_12 = arith.constant 0 : index
    %c0_13 = arith.constant 0 : index
    %27 = vector.load %arg3[%c0_11, %c0_12, %c0_13] : memref<1x8x1xf32, #tpu.memory_space<vmem>>, vector<1x8x1xf32>
    %28 = vector.shape_cast %27 : vector<1x8x1xf32> to vector<8x1xf32>
    %29 = vector.broadcast %28 : vector<8x1xf32> to vector<8x256xf32>
    %30 = arith.mulf %26, %29 : vector<8x256xf32>
    %c0_14 = arith.constant 0 : index
    %c0_15 = arith.constant 0 : index
    %c0_16 = arith.constant 0 : index
    %31 = vector.load %arg4[%c0_14, %c0_15, %c0_16] : memref<1x8x1xf32, #tpu.memory_space<vmem>>, vector<1x8x1xf32>
    %32 = vector.shape_cast %31 : vector<1x8x1xf32> to vector<8x1xf32>
    %33 = vector.broadcast %32 : vector<8x1xf32> to vector<8x256xf32>
    %34 = arith.addf %30, %33 : vector<8x256xf32>
    %35 = arith.negf %34 : vector<8x256xf32>
    %36 = math.exp %35 : vector<8x256xf32>
    %cst_17 = arith.constant 1.000000e+00 : f32
    %37 = vector.broadcast %cst_17 : f32 to vector<8x256xf32>
    %38 = arith.addf %37, %36 : vector<8x256xf32>
    %39 = arith.divf %37, %38 : vector<8x256xf32>
    %40 = vector.shape_cast %39 : vector<8x256xf32> to vector<8x1x256xf32>
    %41 = vector.broadcast %40 : vector<8x1x256xf32> to vector<8x4x256xf32>
    %42 = arith.mulf %1, %41 : vector<8x4x256xf32>
    %c0_18 = arith.constant 0 : index
    %c0_19 = arith.constant 0 : index
    %c0_20 = arith.constant 0 : index
    %c0_21 = arith.constant 0 : index
    %43 = vector.load %arg5[%c0_18, %c0_19, %c0_20, %c0_21] : memref<1x8x4x256xf32, #tpu.memory_space<vmem>>, vector<1x8x4x256xf32>
    %44 = vector.shape_cast %43 : vector<1x8x4x256xf32> to vector<8x4x256xf32>
    %45 = vector.shape_cast %42 : vector<8x4x256xf32> to vector<1x8x4x256xf32>
    tpu.vector_store %arg5[%c0_18, %c0_19, %c0_20, %c0_21], %45 {strides = array<i32>} : memref<1x8x4x256xf32, #tpu.memory_space<vmem>>, vector<1x8x4x256xf32>,
    return
  }
  func.func @transform_0(%arg0: i32, %arg1: i32) -> (i32, i32, i32, i32) {
    %c0_i32 = arith.constant 0 : i32
    %c0_i32_0 = arith.constant 0 : i32
    %c0_i32_1 = arith.constant 0 : i32
    return %arg0, %arg1, %c0_i32, %c0_i32_0 : i32, i32, i32, i32
  }
  func.func @transform_1(%arg0: i32, %arg1: i32) -> (i32, i32, i32) {
    %c0_i32 = arith.constant 0 : i32
    %c0_i32_0 = arith.constant 0 : i32
    %c0_i32_1 = arith.constant 0 : i32
    return %arg1, %c0_i32, %c0_i32_0 : i32, i32, i32
  }
  func.func @transform_2(%arg0: i32, %arg1: i32) -> (i32, i32, i32) {
    %c0_i32 = arith.constant 0 : i32
    %c0_i32_0 = arith.constant 0 : i32
    %c0_i32_1 = arith.constant 0 : i32
    return %arg1, %c0_i32, %c0_i32_0 : i32, i32, i32
  }
  func.func @transform_3(%arg0: i32, %arg1: i32) -> (i32, i32, i32, i32) {
    %c0_i32 = arith.constant 0 : i32
    %c0_i32_0 = arith.constant 0 : i32
    %c0_i32_1 = arith.constant 0 : i32
    return %arg0, %arg1, %c0_i32, %c0_i32_0 : i32, i32, i32, i32
  }
}

</mosaic_0001>

<bundles_post_ra>
// kernel: tpu_custom_call.1
= control target key start
LH: loop header
LB: loop body
LE: loop exit
PB: predicated region body
PF: predicated region fallthrough
CT: control target
= control target key end

     0   :  { %8 = vsyncpa [#allocation3], 0  ;;  %s2527_s0 = inlined_call_operand.hbm [shape: f32[2,8,4,256], index: 0, kind: input, shape index: {}]   ;;  %s2528_s1 = inlined_call_operand.vmem [shape: f32[1,8,1], index: 1, kind: input, shape index: {}]   ;;  %s2529_s2 = inlined_call_operand.vmem [shape: f32[1,8,1], index: 2, kind: input, shape index: {}]   ;;  %s2530_s3 = inlined_call_operand.hbm [shape: f32[2,8,4,256], index: 3, kind: output, shape index: {}]  }
   0x1   :  { %10 = vsyncpa [#allocation3 + $0x1], 0 }
   0x2   :  { %11 = vsyncpa [#allocation4], 0 }
   0x3   :  { %13 = vsyncpa [#allocation4 + $0x1], 0  ;;  %s1672_s12 = smov 0   ;;  %s1674_s13 = smov 0  }
   0x4   :  { %s1676_s14 = smov 0   ;;  %s1678_s15 = smov 0  }
   0x5   :  { %s1680_s16 = smov 0   ;;  %s1682_s17 = smov 0  }
   0x6 LB: > { %s1358_s18 = sadd.s32 4294967295, %s1644_s17   ;;  %s1359_s19 = sadd.s32 4294967294, %s1644_s17   ;;  %s1644_s17 = sphi %s1682_s17, %s19_s17   ;;  %s1640_s16 = sphi %s1680_s16, %s2607_s16   ;;  %s1636_s15 = sphi %s1678_s15, %s2606_s15   ;;  %s1632_s14 = sphi %s1676_s14, %s2605_s14   ;;  %s1628_s13 = sphi %s1674_s13, %s2604_s13   ;;  %s1624_s12 = sphi %s1672_s12, %s2603_s12  }
   0x7   : > { %s31_s20 = sadd.s32 1, %s1640_s16  ;;  %s40_s21 = sadd.s32 1, %s1632_s14 }
   0x8   : > { %p33_p0 = scmp.ge.s32.totalorder %s31_s20, 2  ;;  %p47_p1 = scmp.ne.s32.totalorder %s1632_s14, %s1628_s13 }
   0x9   : > { %p48_p2 = scmp.eq.s32.totalorder %s1644_s17, 0  ;;  %p53_p3 = scmp.ne.s32.totalorder %s1628_s13, %s1624_s12 }
   0xa   : > { %s2609_s20 = smov (%p33_p0, %s31_s20), 0  ;;  %p54_p5 = scmp.eq.s32.totalorder %s1358_s18, 0 }
   0xb   : > { %p1713_p4 = por %p48_p2, %p47_p1  ;;  %s35_s23 = ssub.s32 %s1640_s16, %s2609_s20 }
   0xc   : > { %p131_p6 = scmp.eq.s32.totalorder %s1358_s18, 1  ;;  %p38_p7 = scmp.eq.s32.totalorder %s35_s23, 0 }
   0xd   : > { %p1719_p8 = por %p54_p5, %p53_p3  ;;  %p137_p10 = scmp.eq.s32.totalorder %s1359_s19, 1 }
   0xe   : > { %p1723_p9 = por %p131_p6, %p47_p1  ;;  %p1363_p12 = scmp.ge.s32.totalorder %s1644_s17, 2 }
   0xf   : > { %s1728_s26 = scalar_select %p38_p7, %s1632_s14, %s40_s21  }
  0x10   : > { %p1730_p11 = por %p137_p10, %p53_p3  ;;  %p1405_p13 = scmp.lt.s32.totalorder %s1644_s17, 2 }
  0x11   : > { %s171_s28 = sand.u32 1, %s1632_s14   ;;  %s1391_s30 = sshll.u32 %s1640_s16, 6 }
  0x12   : > { %s1364_s29 = sshll.u32 %s171_s28, 6  ;;  %s183_s6 = scalar_lea.hbm %s2527_s0, %s1391_s30 }
  0x13   : > { %s175_s7 = scalar_lea.vmem [#allocation2], %s1364_s29  ;;  %s184_s9 = sshll.u32 %s183_s6, 4  ;;  %s185_s9 = int_to_ptr.hbm [resolvable:$true] %s184_s9 }
  0x14   : > { %s186_s8 = sshll.u32 %s175_s7, 4  ;;  %p1398_p0 = pnand %p1405_p13, %p1713_p4  ;;  %s187_s8 = int_to_ptr.vmem [resolvable:$true] %s186_s8 }
  0x15   : > { %p1367_p1 = scmp.ge.s32.totalorder %s1644_s17, 1  ;;  %s172_s10 = scalar_lea.sflag [#allocation3], %s171_s28 }
  0x16   : > { %s1646_s11 = smov 128   ;;  %s1647_s18 = smov 8  }
  0x17   : > { %1400 = dma.hbm_to_vmem [thread:$0]  (!%p1398_p0), %s185_s9, 1024, %s187_s8, %s172_s10, %s1646_s11, %s1646_s11, %s1647_s18  }
  0x18   : > { %p194_p2 = scmp.lt.s32.totalorder %s1644_s17, 3 }
  0x1a   : > { %p195_p3 = pnand %p1367_p1, %p194_p2 }
  0x1b   : > { %s1746_s19 = sand.u32 (!%p195_p3), 1, %s1628_s13  }
  0x1c   : > { %198 = sbr.rel (%p195_p3) target bundleno = 616 (0x268), region = 32  ;;  %s1368_s21 = sshll.u32 (!%p195_p3), %s1746_s19, 6 }
  0x1d   : > { %s201_s23 = scalar_lea.sflag (!%p195_p3), [#allocation3], %s1746_s19  ;;  %s204_s22 = scalar_lea.vmem (!%p195_p3), [#allocation2], %s1368_s21 }
  0x21   : > { %1615 = dma.done.wait (%p1719_p8), %s201_s23, 1024  }
  0x22   : > { %1617 = vsyncadd (%p1719_p8), %s201_s23, 4294966272  ;;  %v1756_v0 = vld [vmem:[%s204_s22 + $0x10] sm:$0xff]  ;;  %v1758_v1 = vld [vmem:[%s204_s22] sm:$0xff]  ;;  %vm2531_vm0 = vcmask 1043456   ;;  %v1648_v48 = vmov 839922192  }
  0x23   : > { %270 = vst [vmem:[#allocation1 + $0x20] ss:$2 sm:$0xff] %v1756_v0  ;;  %v1761_v2 = vld [vmem:[%s204_s22 + $0x18] sm:$0xff]  ;;  %v1764_v3 = vld [vmem:[%s204_s22 + $0x8] sm:$0xff]  ;;  %v1768_v4 = vld [vmem:[%s204_s22 + $0x30] sm:$0xff]  ;;  %v363_v49 = vunpack.c.l.s4 %v1648_v48  ;;  %vm589_vm1 = vcmask 1041409  }
  0x24   : > { %262 = vst [vmem:[#allocation1] ss:$2 sm:$0xff] %v1758_v1  ;;  %v1770_v5 = vld [vmem:[%s204_s22 + $0x20] sm:$0xff]  ;;  %v1775_v10 = vld [vmem:[%s204_s22 + $0x38] sm:$0xff]  ;;  %v1780_v16 = vld [vmem:[%s204_s22 + $0x28] sm:$0xff]  ;;  %vm591_vm2 = vcmask 1042434  }
  0x25   : > { %274 = vst [vmem:[#allocation1 + $0x30] ss:$2 sm:$0xff] %v1761_v2  ;;  %v364_v50 = vunpack.c.0.s8 %v363_v49  ;;  %vm593_vm3 = vcmask 1043459   ;;  %vm595_vm4 = vcmask 1044484   ;;  %vm597_vm5 = vcmask 1045509   ;;  %s1392_s4 = sshll.u32 %s1636_s15, 6 }
  0x26   : > { %266 = vst [vmem:[#allocation1 + $0x10] ss:$2 sm:$0xff] %v1764_v3  ;;  %vm599_vm6 = vcmask 1046534   ;;  %vm601_vm7 = vcmask 1047559   ;;  %s1237_s6 = scalar_lea.hbm %s2530_s3, %s1392_s4  ;;  %s235_s7 = scalar_lea.vmem [#allocation5], %s1368_s21 }
  0x27   : > { %s1238_s8 = sshll.u32 %s235_s7, 4  ;;  %s1240_s9 = sshll.u32 %s1237_s6, 4  ;;  %s1239_s8 = int_to_ptr.vmem [resolvable:$true] %s1238_s8  ;;  %s1241_s9 = int_to_ptr.hbm [resolvable:$true] %s1240_s9 }
  0x28   : > { %s1223_s10 = scalar_lea.sflag [#allocation4], %s1746_s19  ;;  %s1576_s11 = sshra.s32 %s1241_s9, 4  ;;  %s1577_s11 = int_to_ptr.hbm [resolvable:$true] %s1576_s11 }
  0x29   : > { %s1578_s18 = scalar_lea.hbm %s1577_s11, 64  ;;  %s1582_s22 = scalar_lea.hbm %s2530_s3, 128 }
  0x2a   : > { %v271_v6 = vld.sshfl [vmem:[#allocation1 + $0x20] sm:$0xff pattern:$0x75316420]  ;;  %v272_v7 = vld.sshfl [vmem:[#allocation1 + $0x28] sm:$0xff pattern:$0x75316420]  ;;  %p1579_p4 = scmp.ne.s32.totalorder %s1577_s11, %s1578_s18  ;;  %p1583_p7 = scmp.lt.s32.totalorder %s1577_s11, %s2530_s3 }
  0x2b   : > { %v316_v8 = vsel %vm2531_vm0, %v271_v6, 0.0  ;;  %v317_v9 = vsel %vm2531_vm0, %v272_v7, 0.0  ;;  %283 = vst [vmem:[#allocation1 + $0x20] ss:$2 sm:$0xff] %v1768_v4  ;;  %p1584_p8 = scmp.lt.s32.totalorder %s1582_s22, %s1578_s18 }
  0x2c   : > { %v318_v11 = vadd.f32 %v317_v9, %v316_v8  ;;  %v263_v12 = vld.sshfl [vmem:[#allocation1] sm:$0xff pattern:$0x75316420]  ;;  %v264_v13 = vld.sshfl [vmem:[#allocation1 + $0x8] sm:$0xff pattern:$0x75316420]  ;;  %p1580_p5 = pnand %p1579_p4, %p1723_p9 }
  0x2d   : > { %v306_v14 = vsel %vm2531_vm0, %v263_v12, 0.0  ;;  %v307_v15 = vsel %vm2531_vm0, %v264_v13, 0.0  ;;  %277 = vst [vmem:[#allocation1] ss:$2 sm:$0xff] %v1770_v5  ;;  %p1585_p10 = por %p1584_p8, %p1583_p7 }
  0x2e   : > { %319 = vadd.xlane.f32.xlu1 %v318_v11  ;;  %v308_v17 = vadd.f32 %v307_v15, %v306_v14  ;;  %v275_v18 = vld.sshfl [vmem:[#allocation1 + $0x30] sm:$0xff pattern:$0x75316420]  ;;  %v276_v19 = vld.sshfl [vmem:[#allocation1 + $0x38] sm:$0xff pattern:$0x75316420]  ;;  %p1581_p6 = pneg %p1580_p5 }
  0x2f   : > { %286 = vst [vmem:[#allocation1 + $0x30] ss:$2 sm:$0xff] %v1775_v10  ;;  %v321_v20 = vsel %vm2531_vm0, %v275_v18, 0.0  ;;  %v322_v21 = vsel %vm2531_vm0, %v276_v19, 0.0 }
  0x30   : > { %309 = vadd.xlane.f32.xlu0 %v308_v17  ;;  %v267_v22 = vld.sshfl [vmem:[#allocation1 + $0x10] sm:$0xff pattern:$0x75316420]  ;;  %v268_v23 = vld.sshfl [vmem:[#allocation1 + $0x18] sm:$0xff pattern:$0x75316420]  ;;  %v323_v26 = vadd.f32 %v322_v21, %v321_v20  ;;  %p1586_p13 = pnand %p1585_p10, %p1581_p6 }
  0x31   : > { %280 = vst [vmem:[#allocation1 + $0x10] ss:$2 sm:$0xff] %v1780_v16  ;;  %v311_v24 = vsel %vm2531_vm0, %v267_v22, 0.0  ;;  %v312_v25 = vsel %vm2531_vm0, %v268_v23, 0.0 }
  0x32   : > { %v313_v27 = vadd.f32 %v312_v25, %v311_v24  ;;  %v284_v30 = vld.sshfl [vmem:[#allocation1 + $0x20] sm:$0xff pattern:$0x75316420]  ;;  %v285_v33 = vld.sshfl [vmem:[#allocation1 + $0x28] sm:$0xff pattern:$0x75316420] }
  0x33   : > { %v336_v41 = vsel %vm2531_vm0, %v284_v30, 0.0  ;;  %v337_v42 = vsel %vm2531_vm0, %v285_v33, 0.0 }
  0x34   : > { %v278_v28 = vld.sshfl [vmem:[#allocation1] sm:$0xff pattern:$0x75316420]  ;;  %v279_v29 = vld.sshfl [vmem:[#allocation1 + $0x8] sm:$0xff pattern:$0x75316420]  ;;  %v338_v46 = vadd.f32 %v337_v42, %v336_v41 }
  0x35   : > { %v326_v31 = vsel %vm2531_vm0, %v278_v28, 0.0  ;;  %v327_v32 = vsel %vm2531_vm0, %v279_v29, 0.0 }
  0x36   : > { %324 = vadd.xlane.f32.xlu1 %v323_v26  ;;  %v328_v34 = vadd.f32 %v327_v32, %v326_v31  ;;  %v287_v35 = vld.sshfl [vmem:[#allocation1 + $0x30] sm:$0xff pattern:$0x75316420]  ;;  %v288_v36 = vld.sshfl [vmem:[#allocation1 + $0x38] sm:$0xff pattern:$0x75316420] }
  0x37   : > { %v341_v37 = vsel %vm2531_vm0, %v287_v35, 0.0  ;;  %v342_v38 = vsel %vm2531_vm0, %v288_v36, 0.0 }
  0x38   : > { %314 = vadd.xlane.f32.xlu0 %v313_v27  ;;  %329 = vadd.xlane.f32.xlu2 %v328_v34  ;;  %v281_v39 = vld.sshfl [vmem:[#allocation1 + $0x10] sm:$0xff pattern:$0x75316420]  ;;  %v282_v40 = vld.sshfl [vmem:[#allocation1 + $0x18] sm:$0xff pattern:$0x75316420]  ;;  %v343_v45 = vadd.f32 %v342_v38, %v341_v37 }
  0x39   : > { %v331_v43 = vsel %vm2531_vm0, %v281_v39, 0.0  ;;  %v332_v44 = vsel %vm2531_vm0, %v282_v40, 0.0 }
  0x3a   : > { %v333_v47 = vadd.f32 %v332_v44, %v331_v43 }
  0x3e   : > { %344 = vadd.xlane.f32.xlu1 %v343_v45 }
  0x40   : > { %339 = vadd.xlane.f32.xlu0 %v338_v46  ;;  %334 = vadd.xlane.f32.xlu2 %v333_v47 }
  0xa1   : > { %v320_v51 = vpop.xlane.xlu1 %319 }
  0xa2   : > { %v348_v52 = vmul.f32 0.00390625, %v320_v51 }
  0xa3   : > { %v310_v53 = vpop.xlane.xlu0 %309 }
  0xa4   : > { %v373_v54 = vperm.slane %v348_v52, %v364_v50  ;;  %v346_v55 = vmul.f32 0.00390625, %v310_v53 }
  0xa6   : > { %v404_v56 = vmul.f32 %v373_v54, %v1756_v0  ;;  %v365_v57 = vperm.slane %v346_v55, %v364_v50 }
  0xa8   : > { %426 = vst [vmem:[#allocation1 + $0x20] ss:$2 sm:$0xff] %v404_v56  ;;  %v402_v58 = vmul.f32 %v365_v57, %v1758_v1 }
  0xa9   : > { %v325_v59 = vpop.xlane.xlu1 %324 }
  0xaa   : > { %418 = vst [vmem:[#allocation1] ss:$2 sm:$0xff] %v402_v58  ;;  %v349_v60 = vmul.f32 0.00390625, %v325_v59 }
  0xab   : > { %v315_v61 = vpop.xlane.xlu0 %314  ;;  %v330_v62 = vpop.xlane.xlu2 %329 }
  0xac   : > { %v377_v63 = vperm.slane %v349_v60, %v364_v50  ;;  %v347_v6 = vmul.f32 0.00390625, %v315_v61  ;;  %v350_v7 = vmul.f32 0.00390625, %v330_v62 }
  0xae   : > { %v405_v8 = vmul.f32 %v377_v63, %v1761_v2  ;;  %v369_v9 = vperm.slane %v347_v6, %v364_v50  ;;  %v381_v11 = vperm.slane %v350_v7, %v364_v50 }
  0xaf   : > { %v427_v12 = vld.sshfl [vmem:[#allocation1 + $0x20] sm:$0xff pattern:$0x75316420]  ;;  %v428_v13 = vld.sshfl [vmem:[#allocation1 + $0x28] sm:$0xff pattern:$0x75316420] }
  0xb0   : > { %430 = vst [vmem:[#allocation1 + $0x30] ss:$2 sm:$0xff] %v405_v8  ;;  %v403_v14 = vmul.f32 %v369_v9, %v1764_v3  ;;  %v406_v15 = vmul.f32 %v381_v11, %v1770_v5  ;;  %v489_v17 = vsel %vm2531_vm0, %v427_v12, 0.0  ;;  %v496_v18 = vsel %vm2531_vm0, %v428_v13, 0.0 }
  0xb1   : > { %v345_v19 = vpop.xlane.xlu1 %344  ;;  %v419_v20 = vld.sshfl [vmem:[#allocation1] sm:$0xff pattern:$0x75316420]  ;;  %v420_v21 = vld.sshfl [vmem:[#allocation1 + $0x8] sm:$0xff pattern:$0x75316420] }
  0xb2   : > { %422 = vst [vmem:[#allocation1 + $0x10] ss:$2 sm:$0xff] %v403_v14  ;;  %v353_v22 = vmul.f32 0.00390625, %v345_v19  ;;  %v461_v23 = vsel %vm2531_vm0, %v419_v20, 0.0  ;;  %v468_v24 = vsel %vm2531_vm0, %v420_v21, 0.0  ;;  %v490_v25 = vrot.slane %v489_v17, 4 }
  0xb3   : > { %v340_v26 = vpop.xlane.xlu0 %339  ;;  %v335_v27 = vpop.xlane.xlu2 %334  ;;  %433 = vst [vmem:[#allocation1] ss:$2 sm:$0xff] %v406_v15  ;;  %v462_v28 = vrot.slane %v461_v23, 4  ;;  %v469_v29 = vrot.slane %v468_v24, 4  ;;  %v497_v36 = vrot.slane %v496_v18, 4 }
  0xb4   : > { %v393_v30 = vperm.slane %v353_v22, %v364_v50  ;;  %v352_v31 = vmul.f32 0.00390625, %v340_v26  ;;  %v351_v32 = vmul.f32 0.00390625, %v335_v27  ;;  %v491_v33 = vadd.f32 %v490_v25, %v489_v17 }
  0xb5   : > { %v463_v34 = vadd.f32 %v462_v28, %v461_v23  ;;  %v470_v35 = vadd.f32 %v469_v29, %v468_v24  ;;  %v498_v49 = vadd.f32 %v497_v36, %v496_v18 }
  0xb6   : > { %v409_v37 = vmul.f32 %v393_v30, %v1775_v10  ;;  %v389_v38 = vperm.slane %v352_v31, %v364_v50  ;;  %v385_v39 = vperm.slane %v351_v32, %v364_v50  ;;  %v492_v40 = vrot.slane %v491_v33, 2 }
  0xb7   : > { %v431_v41 = vld.sshfl [vmem:[#allocation1 + $0x30] sm:$0xff pattern:$0x75316420]  ;;  %v432_v42 = vld.sshfl [vmem:[#allocation1 + $0x38] sm:$0xff pattern:$0x75316420] }
  0xb8   : > { %v408_v43 = vmul.f32 %v389_v38, %v1768_v4  ;;  %v407_v44 = vmul.f32 %v385_v39, %v1780_v16  ;;  %442 = vst [vmem:[#allocation1 + $0x30] ss:$2 sm:$0xff] %v409_v37  ;;  %v464_v45 = vrot.slane %v463_v34, 2  ;;  %v471_v46 = vrot.slane %v470_v35, 2 }
  0xb9   : > { %v423_v47 = vld.sshfl [vmem:[#allocation1 + $0x10] sm:$0xff pattern:$0x75316420]  ;;  %v424_v48 = vld.sshfl [vmem:[#allocation1 + $0x18] sm:$0xff pattern:$0x75316420]  ;;  %v493_v50 = vadd.f32 %v492_v40, %v491_v33 }
  0xba   : > { %436 = vst [vmem:[#allocation1 + $0x10] ss:$2 sm:$0xff] %v407_v44  ;;  %v465_v51 = vadd.f32 %v464_v45, %v463_v34  ;;  %v475_v52 = vsel %vm2531_vm0, %v423_v47, 0.0  ;;  %v482_v53 = vsel %vm2531_vm0, %v424_v48, 0.0  ;;  %v472_v54 = vadd.f32 %v471_v46, %v470_v35 }
  0xbb   : > { %439 = vst [vmem:[#allocation1 + $0x20] ss:$2 sm:$0xff] %v408_v43  ;;  %v476_v55 = vrot.slane %v475_v52, 4  ;;  %v483_v56 = vrot.slane %v482_v53, 4  ;;  %v503_v58 = vsel %vm2531_vm0, %v431_v41, 0.0  ;;  %v499_v62 = vrot.slane %v498_v49, 2 }
  0xbc   : > { %v434_v57 = vld.sshfl [vmem:[#allocation1] sm:$0xff pattern:$0x75316420]  ;;  %v435_v59 = vld.sshfl [vmem:[#allocation1 + $0x8] sm:$0xff pattern:$0x75316420] }
  0xbd   : > { %v477_v60 = vadd.f32 %v476_v55, %v475_v52  ;;  %v484_v61 = vadd.f32 %v483_v56, %v482_v53  ;;  %v510_v63 = vsel %vm2531_vm0, %v432_v42, 0.0  ;;  %v466_v6 = vrot.slane %v465_v51, 1 }
  0xbe   : > { %v494_v7 = vrot.slane %v493_v50, 1  ;;  %v473_v8 = vrot.slane %v472_v54, 1  ;;  %v504_v12 = vrot.slane %v503_v58, 4  ;;  %v511_v13 = vrot.slane %v510_v63, 4 }
  0xbf   : > { %v478_v9 = vrot.slane %v477_v60, 2  ;;  %v485_v11 = vrot.slane %v484_v61, 2  ;;  %v517_v14 = vsel %vm2531_vm0, %v434_v57, 0.0  ;;  %v524_v15 = vsel %vm2531_vm0, %v435_v59, 0.0 }
  0xc0   : > { %v1814_v20 = vadd.f32 %v499_v62, %v498_v49  ;;  %v505_v21 = vadd.f32 %v504_v12, %v503_v58  ;;  %v443_v23 = vld.sshfl [vmem:[#allocation1 + $0x30] sm:$0xff pattern:$0x75316420]  ;;  %v1816_v24 = vadd.f32 %v466_v6, %v465_v51  ;;  %v1818_v26 = vadd.f32 %v494_v7, %v493_v50  ;;  %v444_v50 = vld.sshfl [vmem:[#allocation1 + $0x38] sm:$0xff pattern:$0x75316420] }
  0xc1   : > { %v437_v17 = vld.sshfl [vmem:[#allocation1 + $0x10] sm:$0xff pattern:$0x75316420]  ;;  %v438_v18 = vld.sshfl [vmem:[#allocation1 + $0x18] sm:$0xff pattern:$0x75316420]  ;;  %v479_v19 = vadd.f32 %v478_v9, %v477_v60  ;;  %v486_v25 = vadd.f32 %v485_v11, %v484_v61  ;;  %v512_v27 = vadd.f32 %v511_v13, %v510_v63  ;;  %v1820_v29 = vadd.f32 %v473_v8, %v472_v54 }
  0xc2   : > { %v440_v22 = vld.sshfl [vmem:[#allocation1 + $0x20] sm:$0xff pattern:$0x75316420]  ;;  %v441_v28 = vld.sshfl [vmem:[#allocation1 + $0x28] sm:$0xff pattern:$0x75316420] }
  0xc3   : > { %v480_v30 = vrot.slane %v479_v19, 1  ;;  %v506_v31 = vrot.slane %v505_v21, 2  ;;  %v518_v32 = vrot.slane %v517_v14, 4  ;;  %v513_v33 = vrot.slane %v512_v27, 2 }
  0xc4   : > { %v525_v34 = vrot.slane %v524_v15, 4  ;;  %v531_v35 = vsel %vm2531_vm0, %v437_v17, 0.0  ;;  %v538_v36 = vsel %vm2531_vm0, %v438_v18, 0.0  ;;  %v501_v37 = vrot.slane %v1814_v20, 1 }
  0xc5   : > { %v507_v38 = vadd.f32 %v506_v31, %v505_v21  ;;  %v519_v39 = vadd.f32 %v518_v32, %v517_v14  ;;  %v559_v40 = vsel %vm2531_vm0, %v443_v23, 0.0  ;;  %v487_v41 = vrot.slane %v486_v25, 1 }
  0xc6   : > { %v526_v42 = vadd.f32 %v525_v34, %v524_v15  ;;  %v532_v43 = vrot.slane %v531_v35, 4  ;;  %v539_v44 = vrot.slane %v538_v36, 4  ;;  %v1826_v45 = vadd.f32 %v480_v30, %v479_v19 }
  0xc7   : > { %v520_v46 = vrot.slane %v519_v39, 2  ;;  %v545_v47 = vsel %vm2531_vm0, %v440_v22, 0.0  ;;  %v552_v48 = vsel %vm2531_vm0, %v441_v28, 0.0  ;;  %v514_v49 = vadd.f32 %v513_v33, %v512_v27 }
  0xc8   : > { %v527_v51 = vrot.slane %v526_v42, 2  ;;  %v533_v52 = vadd.f32 %v532_v43, %v531_v35  ;;  %v540_v53 = vadd.f32 %v539_v44, %v538_v36  ;;  %v508_v54 = vrot.slane %v507_v38, 1 }
  0xc9   : > { %v521_v55 = vadd.f32 %v520_v46, %v519_v39  ;;  %v546_v56 = vrot.slane %v545_v47, 4  ;;  %v553_v57 = vrot.slane %v552_v48, 4  ;;  %v1830_v58 = vadd.f32 %v487_v41, %v486_v25 }
  0xca   : > { %v528_v59 = vadd.f32 %v527_v51, %v526_v42  ;;  %v534_v60 = vrot.slane %v533_v52, 2  ;;  %v541_v61 = vrot.slane %v540_v53, 2  ;;  %v560_v7 = vrot.slane %v559_v40, 4 }
  0xcb   : > { %v522_v62 = vrot.slane %v521_v55, 1  ;;  %v547_v63 = vadd.f32 %v546_v56, %v545_v47  ;;  %v554_v6 = vadd.f32 %v553_v57, %v552_v48  ;;  %v515_v8 = vrot.slane %v514_v49, 1 }
  0xcc   : > { %v535_v9 = vadd.f32 %v534_v60, %v533_v52  ;;  %v542_v11 = vadd.f32 %v541_v61, %v540_v53  ;;  %v566_v12 = vsel %vm2531_vm0, %v444_v50, 0.0  ;;  %v1833_v13 = vadd.f32 %v508_v54, %v507_v38 }
  0xcd   : > { %v548_v14 = vrot.slane %v547_v63, 2  ;;  %v555_v15 = vrot.slane %v554_v6, 2  ;;  %v561_v17 = vadd.f32 %v560_v7, %v559_v40  ;;  %v1835_v18 = vadd.f32 %v522_v62, %v521_v55 }
  0xce   : > { %v529_v19 = vrot.slane %v528_v59, 1  ;;  %v536_v21 = vrot.slane %v535_v9, 1  ;;  %v567_v22 = vrot.slane %v566_v12, 4  ;;  %v590_v28 = vsel %vm589_vm1, %v1826_v45, %v1816_v24 }
  0xcf   : > { %v549_v23 = vadd.f32 %v548_v14, %v547_v63  ;;  %v556_v25 = vadd.f32 %v555_v15, %v554_v6  ;;  %v562_v27 = vrot.slane %v561_v17, 2  ;;  %v543_v31 = vrot.slane %v542_v11, 1  ;;  %v774_v63 = vld [vmem:[%s2528_s1] sm:$0xff] }
  0xd0   : > { %v1840_v30 = vadd.f32 %v536_v21, %v535_v9  ;;  %v568_v32 = vadd.f32 %v567_v22, %v566_v12  ;;  %v592_v33 = vsel %vm591_vm2, %v1818_v26, %v590_v28  ;;  %v502_v40 = vadd.f32 %v501_v37, %v1814_v20  ;;  %v810_v6 = vld [vmem:[%s2529_s2] sm:$0xff] }
  0xd1   : > { %v550_v34 = vrot.slane %v549_v23, 1  ;;  %v557_v35 = vrot.slane %v556_v25, 1  ;;  %v563_v36 = vadd.f32 %v562_v27, %v561_v17  ;;  %v594_v39 = vsel %vm593_vm3, %v1833_v13, %v592_v33 }
  0xd2   : > { %v569_v38 = vrot.slane %v568_v32, 2  ;;  %v596_v43 = vsel %vm595_vm4, %v1835_v18, %v594_v39  ;;  %v516_v44 = vadd.f32 %v515_v8, %v514_v49  ;;  %v530_v48 = vadd.f32 %v529_v19, %v528_v59 }
  0xd3   : > { %v551_v41 = vadd.f32 %v550_v34, %v549_v23  ;;  %v564_v42 = vrot.slane %v563_v36, 1  ;;  %v598_v47 = vsel %vm597_vm5, %v1840_v30, %v596_v43  ;;  %v544_v51 = vadd.f32 %v543_v31, %v542_v11 }
  0xd4   : > { %v570_v46 = vadd.f32 %v569_v38, %v568_v32  ;;  %v558_v52 = vadd.f32 %v557_v35, %v556_v25  ;;  %v603_v53 = vsel %vm589_vm1, %v1830_v58, %v1820_v29  ;;  %v1649_v7 = vmov 0  }
  0xd5   : > { %v600_v20 = vsel %vm599_vm6, %v551_v41, %v598_v47  ;;  %v604_v37 = vsel %vm591_vm2, %v502_v40, %v603_v53  ;;  %v565_v54 = vadd.f32 %v564_v42, %v563_v36  ;;  %1461 = vset.pattern.permute.xlu1 %v1649_v7  ;;  %1462 = vset.pattern.permute.xlu2 %v1649_v7 }
  0xd6   : > { %v571_v50 = vrot.slane %v570_v46, 1  ;;  %v605_v49 = vsel %vm593_vm3, %v516_v44, %v604_v37  ;;  %777 = vperm.xlu1 %1461, %v774_v63   ;;  %1463 = vset.pattern.permute.xlu0 %v1649_v7 }
  0xd7   : > { %v606_v55 = vsel %vm595_vm4, %v530_v48, %v605_v49  ;;  %v602_v57 = vsel %vm601_vm7, %v565_v54, %v600_v20 }
  0xd8   : > { %v572_v56 = vadd.f32 %v571_v50, %v570_v46  ;;  %v607_v59 = vsel %vm597_vm5, %v544_v51, %v606_v55 }
  0xd9   : > { %v608_v60 = vsel %vm599_vm6, %v558_v52, %v607_v59 }
  0xda   : > { %v609_v61 = vsel %vm601_vm7, %v572_v56, %v608_v60 }
  0xdb   : > { %v612_v62 = vadd.f32 %v609_v61, %v602_v57 }
  0xdd   : > { %613 = vadd.xlane.f32.xlu2 %v612_v62 }
  0xf5   : > { %813 = vperm.xlu2 %1462, %v810_v6  }
 0x150   : > { %v614_v8 = vpop.xlane.xlu2 %613 }
 0x151   : > { %v615_v9 = vmul.f32 0.00390625, %v614_v8 }
 0x153   : > { %v617_v11 = vrot.slane %v615_v9, 1  ;;  %v618_v12 = vrot.slane %v615_v9, 2  ;;  %v619_v14 = vrot.slane %v615_v9, 3  ;;  %v620_v15 = vrot.slane %v615_v9, 4 }
 0x154   : > { %v621_v17 = vrot.slane %v615_v9, 5  ;;  %v622_v19 = vrot.slane %v615_v9, 6  ;;  %v623_v23 = vrot.slane %v615_v9, 7  ;;  %v1881_v28 = vsub.f32 %v1816_v24, %v615_v9 }
 0x155   : > { %v1869_v21 = vsub.f32 %v1826_v45, %v617_v11  ;;  %v1872_v22 = vsub.f32 %v1818_v26, %v618_v12  ;;  %v1875_v25 = vsub.f32 %v1830_v58, %v617_v11  ;;  %v1878_v27 = vsub.f32 %v1833_v13, %v619_v14 }
 0x156   : > { %v1884_v31 = vsub.f32 %v1820_v29, %v615_v9  ;;  %v1886_v32 = vsub.f32 %v502_v40, %v618_v12  ;;  %v1889_v45 = vsub.f32 %v1835_v18, %v620_v15  ;;  %v1891_v26 = vsub.f32 %v516_v44, %v619_v14 }
 0x157   : > { %v1893_v33 = vsub.f32 %v530_v48, %v620_v15  ;;  %v1896_v58 = vsub.f32 %v1840_v30, %v621_v17  ;;  %v1898_v13 = vsub.f32 %v544_v51, %v621_v17  ;;  %v1900_v34 = vsub.f32 %v551_v41, %v622_v19 }
 0x158   : > { %v1902_v24 = vsub.f32 %v558_v52, %v622_v19  ;;  %v650_v29 = vmul.f32 %v1869_v21, %v1869_v21  ;;  %v652_v18 = vmul.f32 %v1872_v22, %v1872_v22  ;;  %v1908_v35 = vsub.f32 %v565_v54, %v623_v23 }
 0x159   : > { %v1910_v36 = vsub.f32 %v572_v56, %v623_v23  ;;  %v651_v30 = vmul.f32 %v1875_v25, %v1875_v25  ;;  %v654_v38 = vmul.f32 %v1878_v27, %v1878_v27  ;;  %v648_v39 = vmul.f32 %v1881_v28, %v1881_v28 }
 0x15a   : > { %v649_v40 = vmul.f32 %v1884_v31, %v1884_v31  ;;  %v653_v41 = vmul.f32 %v1886_v32, %v1886_v32  ;;  %v656_v42 = vmul.f32 %v1889_v45, %v1889_v45  ;;  %v655_v43 = vmul.f32 %v1891_v26, %v1891_v26 }
 0x15b   : > { %v657_v44 = vmul.f32 %v1893_v33, %v1893_v33  ;;  %v658_v46 = vmul.f32 %v1896_v58, %v1896_v58  ;;  %v680_v47 = vrot.slane %v650_v29, 7  ;;  %v659_v48 = vmul.f32 %v1898_v13, %v1898_v13 }
 0x15c   : > { %v660_v51 = vmul.f32 %v1900_v34, %v1900_v34  ;;  %v661_v52 = vmul.f32 %v1902_v24, %v1902_v24  ;;  %v682_v53 = vrot.slane %v652_v18, 6  ;;  %v662_v50 = vmul.f32 %v1908_v35, %v1908_v35 }
 0x15d   : > { %v681_v20 = vsel %vm589_vm1, %v680_v47, %v648_v39  ;;  %v684_v37 = vrot.slane %v654_v38, 5  ;;  %v694_v54 = vrot.slane %v651_v30, 7  ;;  %v663_v49 = vmul.f32 %v1910_v36, %v1910_v36 }
 0x15e   : > { %v683_v55 = vsel %vm591_vm2, %v682_v53, %v681_v20  ;;  %v686_v56 = vrot.slane %v656_v42, 4  ;;  %v696_v57 = vrot.slane %v653_v41, 6  ;;  %v688_v60 = vrot.slane %v658_v46, 3 }
 0x15f   : > { %v685_v59 = vsel %vm593_vm3, %v684_v37, %v683_v55  ;;  %v695_v61 = vsel %vm589_vm1, %v694_v54, %v649_v40  ;;  %v698_v62 = vrot.slane %v655_v43, 5  ;;  %v690_v6 = vrot.slane %v660_v51, 2 }
 0x160   : > { %v687_v63 = vsel %vm595_vm4, %v686_v56, %v685_v59  ;;  %v697_v7 = vsel %vm591_vm2, %v696_v57, %v695_v61  ;;  %v700_v8 = vrot.slane %v657_v44, 4  ;;  %v692_v11 = vrot.slane %v662_v50, 1 }
 0x161   : > { %v689_v9 = vsel %vm597_vm5, %v688_v60, %v687_v63  ;;  %v699_v12 = vsel %vm593_vm3, %v698_v62, %v697_v7  ;;  %v702_v14 = vrot.slane %v659_v48, 3  ;;  %v704_v19 = vrot.slane %v661_v52, 2  ;;  %v1954_v60 = vpop.permute.xlu1 %777 }
 0x162   : > { %v691_v15 = vsel %vm599_vm6, %v690_v6, %v689_v9  ;;  %v701_v17 = vsel %vm595_vm4, %v700_v8, %v699_v12  ;;  %v706_v18 = vrot.slane %v663_v49, 1  ;;  %v779_v6 = vrot.slane %v1954_v60, 1  ;;  %v1959_v12 = vpop.permute.xlu2 %813 }
 0x163   : > { %v693_v23 = vsel %vm601_vm7, %v692_v11, %v691_v15  ;;  %v703_v29 = vsel %vm597_vm5, %v702_v14, %v701_v17  ;;  %v780_v9 = vrot.slane %v1954_v60, 2  ;;  %v781_v11 = vrot.slane %v1954_v60, 3 }
 0x164   : > { %v705_v30 = vsel %vm599_vm6, %v704_v19, %v703_v29  ;;  %v782_v17 = vrot.slane %v1954_v60, 4  ;;  %v783_v19 = vrot.slane %v1954_v60, 5 }
 0x165   : > { %v707_v38 = vsel %vm601_vm7, %v706_v18, %v705_v30  ;;  %v784_v30 = vrot.slane %v1954_v60, 6 }
 0x166   : > { %v710_v39 = vadd.f32 %v707_v38, %v693_v23 }
 0x168   : > { %711 = vadd.xlane.f32.xlu0 %v710_v39 }
 0x1db   : > { %v712_v40 = vpop.xlane.xlu0 %711 }
 0x1dc   : > { %v713_v41 = vmul.f32 0.003921569, %v712_v40  ;;  %v785_v40 = vrot.slane %v1954_v60, 7 }
 0x1de   : > { %1464 = vrsqrt.f32 %v713_v41  ;;  %vm721_vm8 = vcmp.eq.f32.partialorder %v713_v41, inf  ;;  %v724_v52 = vand.u32 2147483648, %v713_v41  ;;  %vm723_vm9 = vcmp.eq.f32.partialorder %v713_v41, 0.0 }
 0x1e4   : > { %v1465_v42 = vpop.eup %1464 }
 0x1e5   : > { %v715_v43 = vmul.f32 %v1465_v42, %v713_v41 }
 0x1e7   : > { %v716_v44 = vmul.f32 %v1465_v42, %v715_v43  ;;  %v817_v43 = vrot.slane %v1959_v12, 3 }
 0x1e9   : > { %v717_v46 = vmul.f32 0.5, %v716_v44 }
 0x1eb   : > { %v718_v47 = vsub.f32 1.5, %v717_v46  ;;  %v819_v46 = vrot.slane %v1959_v12, 5 }
 0x1ed   : > { %v719_v48 = vmul.f32 %v1465_v42, %v718_v47  ;;  %v816_v42 = vrot.slane %v1959_v12, 2 }
 0x1ef   : > { %v720_v51 = vmul.f32 %v719_v48, %v713_v41 }
 0x1f1   : > { %v722_v53 = vsel %vm721_vm8, %v713_v41, %v720_v51  ;;  %v815_v41 = vrot.slane %v1959_v12, 1 }
 0x1f2   : > { %v725_v50 = vsel %vm723_vm9, %v724_v52, %v722_v53 }
 0x1f3   : > { %v726_v20 = vadd.f32 1e-05, %v725_v50  ;;  %v820_v50 = vrot.slane %v1959_v12, 6 }
 0x1f5   : > { %1466 = vrcp.f32 %v726_v20  ;;  %v738_v55 = vand.u32 2147483648, %v726_v20  ;;  %v736_v57 = vand.u32 2147483647, %v726_v20  ;;  %vm732_vm11 = vweird.f32 %v726_v20 }
 0x1f7   : > { %v739_v61 = vor.u32 1.1754944e-38, %v738_v55  ;;  %vm737_vm13 = vcmp.eq.f32.partialorder %v736_v57, 8.507059e+37 }
 0x1fb   : > { %v1467_v37 = vpop.eup %1466 }
 0x1fc   : > { %v728_v54 = vmul.f32 %v1467_v37, %v726_v20  ;;  %vm733_vm10 = vweird.f32 %v1467_v37 }
 0x1fd   : > { %vm734_vm12 = vmor %vm732_vm11, %vm733_vm10 }
 0x1fe   : > { %v729_v49 = vsub.f32 1.0, %v728_v54  ;;  %v821_v54 = vrot.slane %v1959_v12, 7 }
 0x200   : > { %v730_v56 = vmul.f32 %v1467_v37, %v729_v49 }
 0x202   : > { %v731_v59 = vadd.f32 %v1467_v37, %v730_v56 }
 0x204   : > { %v735_v62 = vsel %vm734_vm12, %v1467_v37, %v731_v59 }
 0x205   : > { %v740_v63 = vsel %vm737_vm13, %v739_v61, %v735_v62 }
 0x206   : > { %v743_v7 = vrot.slane %v740_v63, 1  ;;  %v744_v8 = vrot.slane %v740_v63, 2  ;;  %v745_v14 = vrot.slane %v740_v63, 3  ;;  %v758_v15 = vmul.f32 %v740_v63, %v1881_v28 }
 0x207   : > { %v759_v23 = vmul.f32 %v740_v63, %v1884_v31  ;;  %v746_v38 = vrot.slane %v740_v63, 4  ;;  %v818_v31 = vrot.slane %v1959_v12, 4  ;;  %v749_v20 = vrot.slane %v740_v63, 7 }
 0x208   : > { %v760_v29 = vmul.f32 %v743_v7, %v1869_v21  ;;  %v761_v18 = vmul.f32 %v743_v7, %v1875_v25  ;;  %v762_v39 = vmul.f32 %v744_v8, %v1872_v22  ;;  %v763_v28 = vmul.f32 %v744_v8, %v1886_v32 }
 0x209   : > { %v747_v21 = vrot.slane %v740_v63, 5  ;;  %v764_v25 = vmul.f32 %v745_v14, %v1878_v27  ;;  %v794_v44 = vmul.f32 %v1954_v60, %v758_v15  ;;  %v765_v22 = vmul.f32 %v745_v14, %v1891_v26 }
 0x20a   : > { %v795_v47 = vmul.f32 %v1954_v60, %v759_v23  ;;  %v796_v48 = vmul.f32 %v779_v6, %v760_v29  ;;  %v797_v51 = vmul.f32 %v779_v6, %v761_v18  ;;  %v748_v32 = vrot.slane %v740_v63, 6 }
 0x20b   : > { %v766_v52 = vmul.f32 %v746_v38, %v1889_v45  ;;  %v798_v53 = vmul.f32 %v780_v9, %v762_v39  ;;  %v767_v37 = vmul.f32 %v746_v38, %v1893_v33  ;;  %v799_v27 = vmul.f32 %v780_v9, %v763_v28 }
 0x20c   : > { %v768_v49 = vmul.f32 %v747_v21, %v1896_v58  ;;  %v769_v26 = vmul.f32 %v747_v21, %v1898_v13  ;;  %v800_v55 = vmul.f32 %v781_v11, %v764_v25  ;;  %v830_v56 = vadd.f32 %v1959_v12, %v794_v44 }
 0x20d   : > { %v801_v57 = vmul.f32 %v781_v11, %v765_v22  ;;  %v831_v59 = vadd.f32 %v1959_v12, %v795_v47  ;;  %v832_v45 = vadd.f32 %v815_v41, %v796_v48  ;;  %v833_v60 = vadd.f32 %v815_v41, %v797_v51 }
 0x20e   : > { %v770_v61 = vmul.f32 %v748_v32, %v1900_v34  ;;  %v771_v62 = vmul.f32 %v748_v32, %v1902_v24  ;;  %v802_v33 = vmul.f32 %v782_v17, %v766_v52  ;;  %v834_v63 = vadd.f32 %v816_v42, %v798_v53 }
 0x20f   : > { %v772_v6 = vmul.f32 %v749_v20, %v1908_v35  ;;  %v773_v58 = vmul.f32 %v749_v20, %v1910_v36  ;;  %v803_v7 = vmul.f32 %v782_v17, %v767_v37  ;;  %v835_v13 = vadd.f32 %v816_v42, %v799_v27 }
 0x210   : > { %v804_v8 = vmul.f32 %v783_v19, %v768_v49  ;;  %v805_v9 = vmul.f32 %v783_v19, %v769_v26  ;;  %v836_v14 = vadd.f32 %v817_v43, %v800_v55  ;;  %v1370_v11 = vmul.f32 -1.442695, %v830_v56 }
 0x211   : > { %v837_v15 = vadd.f32 %v817_v43, %v801_v57  ;;  %v1371_v12 = vmul.f32 -1.442695, %v831_v59  ;;  %v1372_v23 = vmul.f32 -1.442695, %v832_v45  ;;  %v1373_v29 = vmul.f32 -1.442695, %v833_v60 }
 0x212   : > { %v806_v18 = vmul.f32 %v784_v30, %v770_v61  ;;  %v838_v34 = vadd.f32 %v818_v31, %v802_v33  ;;  %1468 = vpow2.f32 %v1370_v11  ;;  %v1374_v24 = vmul.f32 -1.442695, %v834_v63 }
 0x213   : > { %v807_v38 = vmul.f32 %v784_v30, %v771_v62  ;;  %v839_v39 = vadd.f32 %v818_v31, %v803_v7  ;;  %1470 = vpow2.f32 %v1371_v12  ;;  %v1375_v35 = vmul.f32 -1.442695, %v835_v13 }
 0x214   : > { %v808_v41 = vmul.f32 %v785_v40, %v772_v6  ;;  %v840_v36 = vadd.f32 %v819_v46, %v804_v8  ;;  %1472 = vpow2.f32 %v1372_v23  ;;  %v1376_v17 = vmul.f32 -1.442695, %v836_v14 }
 0x215   : > { %v809_v28 = vmul.f32 %v785_v40, %v773_v58  ;;  %v841_v19 = vadd.f32 %v819_v46, %v805_v9  ;;  %1474 = vpow2.f32 %v1373_v29  ;;  %v1377_v42 = vmul.f32 -1.442695, %v837_v15 }
 0x216   : > { %v842_v43 = vadd.f32 %v820_v50, %v806_v18  ;;  %1476 = vpow2.f32 %v1374_v24  ;;  %v1378_v21 = vmul.f32 -1.442695, %v838_v34  ;;  %v843_v25 = vadd.f32 %v820_v50, %v807_v38 }
 0x217   : > { %1478 = vpow2.f32 %v1375_v35  ;;  %v1379_v44 = vmul.f32 -1.442695, %v839_v39  ;;  %v844_v47 = vadd.f32 %v821_v54, %v808_v41  ;;  %v1380_v30 = vmul.f32 -1.442695, %v840_v36 }
 0x218   : > { %v1469_v22 = vpop.eup %1468  ;;  %1480 = vpow2.f32 %v1376_v17  ;;  %v845_v48 = vadd.f32 %v821_v54, %v809_v28  ;;  %v1381_v51 = vmul.f32 -1.442695, %v841_v19  ;;  %v1382_v40 = vmul.f32 -1.442695, %v842_v43 }
 0x219   : > { %v1471_v31 = vpop.eup %1470  ;;  %1482 = vpow2.f32 %v1377_v42  ;;  %v1383_v52 = vmul.f32 -1.442695, %v843_v25  ;;  %v1384_v20 = vmul.f32 -1.442695, %v844_v47  ;;  %v1992_v49 = vadd.f32 1.0, %v1469_v22 }
 0x21a   : > { %v1473_v32 = vpop.eup %1472  ;;  %1484 = vpow2.f32 %v1378_v21  ;;  %v1385_v37 = vmul.f32 -1.442695, %v845_v48  ;;  %v1994_v54 = vadd.f32 1.0, %v1471_v31 }
 0x21b   : > { %v1475_v46 = vpop.eup %1474  ;;  %1486 = vpow2.f32 %v1379_v44  ;;  %v1996_v56 = vadd.f32 1.0, %v1473_v32  ;;  %v921_v6 = vand.u32 2147483648, %v1992_v49  ;;  %v919_v9 = vand.u32 2147483647, %v1992_v49 }
 0x21c   : > { %v1477_v53 = vpop.eup %1476  ;;  %1488 = vpow2.f32 %v1380_v30  ;;  %v1998_v59 = vadd.f32 1.0, %v1475_v46  ;;  %v936_v7 = vand.u32 2147483648, %v1994_v54  ;;  %v934_v14 = vand.u32 2147483647, %v1994_v54 }
 0x21d   : > { %v1479_v50 = vpop.eup %1478  ;;  %1490 = vpow2.f32 %v1381_v51  ;;  %v2000_v60 = vadd.f32 1.0, %v1477_v53  ;;  %v951_v11 = vand.u32 2147483648, %v1996_v56  ;;  %v2021_v23 = vor.u32 1.1754944e-38, %v921_v6 }
 0x21e   : > { %v1481_v27 = vpop.eup %1480  ;;  %1492 = vpow2.f32 %v1382_v40  ;;  %v2003_v62 = vadd.f32 1.0, %v1479_v50  ;;  %v966_v29 = vand.u32 2147483648, %v1998_v59  ;;  %v2031_v38 = vor.u32 1.1754944e-38, %v936_v7 }
 0x21f   : > { %v1483_v26 = vpop.eup %1482  ;;  %1494 = vpow2.f32 %v1383_v52  ;;  %v2006_v63 = vadd.f32 1.0, %v1481_v27  ;;  %v949_v39 = vand.u32 2147483647, %v1996_v56  ;;  %v964_v28 = vand.u32 2147483647, %v1998_v59 }
 0x220   : > { %v1485_v55 = vpop.eup %1484  ;;  %1496 = vpow2.f32 %v1384_v20  ;;  %v2019_v12 = vadd.f32 1.0, %v1483_v26  ;;  %vm915_vm14 = vweird.f32 %v1992_v49  ;;  %v2050_v25 = vor.u32 1.1754944e-38, %v951_v11 }
 0x221   : > { %v1487_v57 = vpop.eup %1486  ;;  %1498 = vpow2.f32 %v1385_v37  ;;  %v2027_v34 = vadd.f32 1.0, %v1485_v55  ;;  %vm930_vm15 = vweird.f32 %v1994_v54  ;;  %v2059_v31 = vor.u32 1.1754944e-38, %v966_v29 }
 0x222   : > { %v1489_v45 = vpop.eup %1488  ;;  %1500 = vrcp.f32 %v1992_v49  ;;  %v2036_v41 = vadd.f32 1.0, %v1487_v57  ;;  %vm945_vm1 = vweird.f32 %v1996_v56  ;;  %v979_v46 = vand.u32 2147483647, %v2000_v60 }
 0x223   : > { %v1491_v61 = vpop.eup %1490  ;;  %1502 = vrcp.f32 %v1994_v54  ;;  %v2038_v36 = vadd.f32 1.0, %v1489_v45  ;;  %vm960_vm2 = vweird.f32 %v1998_v59  ;;  %v981_v50 = vand.u32 2147483648, %v2000_v60 }
 0x224   : > { %v1493_v33 = vpop.eup %1492  ;;  %1504 = vrcp.f32 %v1996_v56  ;;  %v2045_v42 = vadd.f32 1.0, %v1491_v61  ;;  %vm975_vm3 = vweird.f32 %v2000_v60  ;;  %vm2085_vm4 = vcmp.eq.f32.partialorder %v919_v9, 8.507059e+37 }
 0x225   : > { %v1495_v58 = vpop.eup %1494  ;;  %1506 = vrcp.f32 %v1998_v59  ;;  %v2054_v22 = vadd.f32 1.0, %v1493_v33  ;;  %vm2092_vm7 = vcmp.eq.f32.partialorder %v934_v14, 8.507059e+37  ;;  %vm2096_vm8 = vcmp.eq.f32.partialorder %v949_v39, 8.507059e+37 }
 0x226   : > { %v1497_v13 = vpop.eup %1496  ;;  %1508 = vrcp.f32 %v2000_v60  ;;  %v2063_v51 = vadd.f32 1.0, %v1495_v58  ;;  %v994_v58 = vand.u32 2147483647, %v2003_v62  ;;  %vm2108_vm11 = vcmp.eq.f32.partialorder %v964_v28, 8.507059e+37 }
 0x227   : > { %v1499_v8 = vpop.eup %1498  ;;  %1510 = vrcp.f32 %v2003_v62  ;;  %v2081_v45 = vadd.f32 1.0, %v1497_v13  ;;  %vm2112_vm12 = vcmp.eq.f32.partialorder %v979_v46, 8.507059e+37  ;;  %v996_v28 = vand.u32 2147483648, %v2003_v62 }
 0x228   : > { %v2017_v15 = vpop.eup %1500  ;;  %1512 = vrcp.f32 %v2006_v63  ;;  %v2083_v61 = vadd.f32 1.0, %v1499_v8  ;;  %v1069_v46 = vand.u32 2147483647, %v2038_v36 }
 0x229   : > { %v2025_v18 = vpop.eup %1502  ;;  %v911_v24 = vmul.f32 %v2017_v15, %v1992_v49  ;;  %vm916_vm6 = vweird.f32 %v2017_v15  ;;  %1514 = vrcp.f32 %v2019_v12 }
 0x22a   : > { %v2034_v35 = vpop.eup %1504  ;;  %v926_v17 = vmul.f32 %v2025_v18, %v1994_v54  ;;  %vm931_vm9 = vweird.f32 %v2025_v18  ;;  %vm2121_vm13 = vmor %vm915_vm14, %vm916_vm6  ;;  %1516 = vrcp.f32 %v2027_v34 }
 0x22b   : > { %v2043_v19 = vpop.eup %1506  ;;  %v912_v43 = vsub.f32 1.0, %v911_v24  ;;  %v941_v21 = vmul.f32 %v2034_v35, %v1996_v56  ;;  %v982_v24 = vor.u32 1.1754944e-38, %v981_v50  ;;  %vm946_vm10 = vweird.f32 %v2034_v35  ;;  %vm2131_vm5 = vmor %vm930_vm15, %vm931_vm9 }
 0x22c   : > { %v2052_v44 = vpop.eup %1508  ;;  %v927_v47 = vsub.f32 1.0, %v926_v17  ;;  %v956_v30 = vmul.f32 %v2043_v19, %v1998_v59  ;;  %vm961_vm0 = vweird.f32 %v2043_v19  ;;  %vm2146_vm15 = vmor %vm945_vm1, %vm946_vm10  ;;  %1518 = vrcp.f32 %v2036_v41 }
 0x22d   : > { %v2061_v48 = vpop.eup %1510  ;;  %v942_v32 = vsub.f32 1.0, %v941_v21  ;;  %v971_v40 = vmul.f32 %v2052_v44, %v2000_v60  ;;  %v913_v53 = vmul.f32 %v2017_v15, %v912_v43  ;;  %vm976_vm14 = vweird.f32 %v2052_v44  ;;  %vm2163_vm1 = vmor %vm960_vm2, %vm961_vm0 }
 0x22e   : > { %v2069_v52 = vpop.eup %1512  ;;  %v957_v20 = vsub.f32 1.0, %v956_v30  ;;  %v986_v37 = vmul.f32 %v2061_v48, %v2003_v62  ;;  %v928_v27 = vmul.f32 %v2025_v18, %v927_v47  ;;  %vm991_vm6 = vweird.f32 %v2061_v48  ;;  %vm2171_vm10 = vmor %vm975_vm3, %vm976_vm14 }
 0x22f   : > { %v943_v26 = vmul.f32 %v2034_v35, %v942_v32  ;;  %v972_v55 = vsub.f32 1.0, %v971_v40  ;;  %v1001_v57 = vmul.f32 %v2069_v52, %v2006_v63  ;;  %v914_v29 = vadd.f32 %v2017_v15, %v913_v53  ;;  %v2224_v33 = vpop.eup %1514 }
 0x230   : > { %v987_v6 = vsub.f32 1.0, %v986_v37  ;;  %v958_v8 = vmul.f32 %v2043_v19, %v957_v20  ;;  %v929_v14 = vadd.f32 %v2025_v18, %v928_v27  ;;  %v1009_v32 = vand.u32 2147483647, %v2006_v63 }
 0x231   : > { %v973_v9 = vmul.f32 %v2052_v44, %v972_v55  ;;  %v1002_v11 = vsub.f32 1.0, %v1001_v57  ;;  %v944_v43 = vadd.f32 %v2034_v35, %v943_v26  ;;  %v1011_v40 = vand.u32 2147483648, %v2006_v63 }
 0x232   : > { %v988_v17 = vmul.f32 %v2061_v48, %v987_v6  ;;  %v959_v49 = vadd.f32 %v2043_v19, %v958_v8  ;;  %v918_v20 = vsel %vm2121_vm13, %v2017_v15, %v914_v29  ;;  %vm1006_vm9 = vweird.f32 %v2069_v52 }
 0x233   : > { %v1003_v47 = vmul.f32 %v2069_v52, %v1002_v11  ;;  %v974_v53 = vadd.f32 %v2052_v44, %v973_v9  ;;  %v933_v37 = vsel %vm2131_vm5, %v2025_v18, %v929_v14  ;;  %v948_v15 = vsel %vm2146_vm15, %v2034_v35, %v944_v43 }
 0x234   : > { %v989_v50 = vadd.f32 %v2061_v48, %v988_v17  ;;  %vm2175_vm5 = vcmp.eq.f32.partialorder %v994_v58, 8.507059e+37  ;;  %v997_v26 = vor.u32 1.1754944e-38, %v996_v28  ;;  %vm1005_vm0 = vweird.f32 %v2006_v63 }
 0x235   : > { %v1004_v27 = vadd.f32 %v2069_v52, %v1003_v47  ;;  %vm2180_vm2 = vcmp.eq.f32.partialorder %v1009_v32, 8.507059e+37  ;;  %v2187_v55 = vsel %vm2085_vm4, %v2021_v23, %v918_v20  ;;  %v963_v60 = vsel %vm2163_vm1, %v2043_v19, %v959_v49  ;;  %vm2219_vm4 = vmor %vm1005_vm0, %vm1006_vm9 }
 0x236   : > { %v978_v57 = vsel %vm2171_vm10, %v2052_v44, %v974_v53  ;;  %vm2560_vm3 = vweird.f32 %v2003_v62  ;;  %v2207_v23 = vsel %vm2092_vm7, %v2031_v38, %v933_v37  ;;  %v2212_v19 = vsel %vm2096_vm8, %v2050_v25, %v948_v15 }
 0x237   : > { %vm2199_vm13 = vmor %vm2560_vm3, %vm991_vm6  ;;  %1520 = vrcp.f32 %v2038_v36  ;;  %v1008_v38 = vsel %vm2219_vm4, %v2069_v52, %v1004_v27  ;;  %v1012_v25 = vor.u32 1.1754944e-38, %v1011_v40  ;;  %v1026_v6 = vand.u32 2147483648, %v2019_v12  ;;  %v2243_v52 = vpop.eup %1516 }
 0x238   : > { %v993_v62 = vsel %vm2199_vm13, %v2061_v48, %v989_v50  ;;  %v1041_v58 = vand.u32 2147483648, %v2027_v34  ;;  %v2234_v48 = vsel %vm2108_vm11, %v2059_v31, %v963_v60  ;;  %v2238_v7 = vsel %vm2112_vm12, %v982_v24, %v978_v57  ;;  %v2260_v43 = vpop.eup %1518 }
 0x239   : > { %v1016_v13 = vmul.f32 %v2224_v33, %v2019_v12  ;;  %v1024_v8 = vand.u32 2147483647, %v2019_v12  ;;  %v2247_v9 = vsel %vm2175_vm5, %v997_v26, %v993_v62  ;;  %v1056_v11 = vand.u32 2147483648, %v2036_v41 }
 0x23a   : > { %v1071_v31 = vand.u32 2147483648, %v2038_v36  ;;  %1522 = vrcp.f32 %v2045_v42  ;;  %v2254_v29 = vsel %vm2180_vm2, %v1012_v25, %v1008_v38  ;;  %vm1020_vm7 = vweird.f32 %v2019_v12 }
 0x23b   : > { %v1017_v24 = vsub.f32 1.0, %v1016_v13  ;;  %v1031_v17 = vmul.f32 %v2243_v52, %v2027_v34  ;;  %v1039_v14 = vand.u32 2147483647, %v2027_v34  ;;  %v2262_v39 = vor.u32 1.1754944e-38, %v1026_v6 }
 0x23c   : > { %vm1035_vm8 = vweird.f32 %v2027_v34  ;;  %v2265_v21 = vor.u32 1.1754944e-38, %v1041_v58  ;;  %v1054_v47 = vand.u32 2147483647, %v2036_v41  ;;  %1524 = vrcp.f32 %v2054_v22 }
 0x23d   : > { %v2269_v30 = vpop.eup %1520  ;;  %v1018_v28 = vmul.f32 %v2224_v33, %v1017_v24  ;;  %v1032_v32 = vsub.f32 1.0, %v1031_v17  ;;  %v1046_v40 = vmul.f32 %v2260_v43, %v2036_v41  ;;  %vm1050_vm11 = vweird.f32 %v2036_v41 }
 0x23e   : > { %vm1021_vm12 = vweird.f32 %v2224_v33  ;;  %v2277_v49 = vor.u32 1.1754944e-38, %v1056_v11  ;;  %v1061_v53 = vmul.f32 %v2269_v30, %v2038_v36  ;;  %vm1065_vm14 = vweird.f32 %v2038_v36 }
 0x23f   : > { %v2282_v20 = vor.u32 1.1754944e-38, %v1071_v31  ;;  %vm2284_vm15 = vcmp.eq.f32.partialorder %v1024_v8, 8.507059e+37  ;;  %v1033_v50 = vmul.f32 %v2243_v52, %v1032_v32  ;;  %vm1036_vm6 = vweird.f32 %v2243_v52  ;;  %vm2328_vm4 = vmor %vm1020_vm7, %vm1021_vm12 }
 0x240   : > { %v1047_v37 = vsub.f32 1.0, %v1046_v40  ;;  %v1084_v15 = vand.u32 2147483647, %v2045_v42  ;;  %v2292_v56 = vpop.eup %1522  ;;  %v1062_v27 = vsub.f32 1.0, %v1061_v53  ;;  %v1086_v18 = vand.u32 2147483648, %v2045_v42  ;;  %vm2345_vm7 = vmor %vm1035_vm8, %vm1036_vm6 }
 0x241   : > { %v1099_v35 = vand.u32 2147483647, %v2054_v22  ;;  %1526 = vrcp.f32 %v2063_v51  ;;  %v1019_v26 = vadd.f32 %v2224_v33, %v1018_v28  ;;  %vm2298_vm1 = vcmp.eq.f32.partialorder %v1039_v14, 8.507059e+37 }
 0x242   : > { %v1048_v60 = vmul.f32 %v2260_v43, %v1047_v37  ;;  %vm2303_vm10 = vcmp.eq.f32.partialorder %v1054_v47, 8.507059e+37  ;;  %v1076_v63 = vmul.f32 %v2292_v56, %v2045_v42  ;;  %v1525_v62 = vpop.eup %1524  ;;  %v1034_v44 = vadd.f32 %v2243_v52, %v1033_v50 }
 0x243   : > { %vm1051_vm0 = vweird.f32 %v2260_v43  ;;  %v1063_v38 = vmul.f32 %v2269_v30, %v1062_v27  ;;  %vm1066_vm2 = vweird.f32 %v2269_v30  ;;  %vm2314_vm3 = vcmp.eq.f32.partialorder %v1069_v46, 8.507059e+37 }
 0x244   : > { %v1049_v6 = vadd.f32 %v2260_v43, %v1048_v60  ;;  %v1077_v58 = vsub.f32 1.0, %v1076_v63  ;;  %vm2319_vm13 = vcmp.eq.f32.partialorder %v1084_v15, 8.507059e+37  ;;  %v1091_v8 = vmul.f32 %v1525_v62, %v2054_v22  ;;  %vm2359_vm8 = vmor %vm1050_vm11, %vm1051_vm0 }
 0x245   : > { %v1064_v31 = vadd.f32 %v2269_v30, %v1063_v38  ;;  %v1087_v24 = vor.u32 1.1754944e-38, %v1086_v18  ;;  %vm2333_vm5 = vcmp.eq.f32.partialorder %v1099_v35, 8.507059e+37  ;;  %v1101_v14 = vand.u32 2147483648, %v2054_v22 }
 0x246   : > { %v1023_v47 = vsel %vm2328_vm4, %v2224_v33, %v1019_v26  ;;  %v1078_v28 = vmul.f32 %v2292_v56, %v1077_v58  ;;  %vm1081_vm12 = vweird.f32 %v2292_v56  ;;  %v1092_v32 = vsub.f32 1.0, %v1091_v8  ;;  %vm2372_vm4 = vmor %vm1065_vm14, %vm1066_vm2 }
 0x247   : > { %vm1110_vm9 = vweird.f32 %v2063_v51  ;;  %v1527_v40 = vpop.eup %1526  ;;  %v1038_v33 = vsel %vm2345_vm7, %v2243_v52, %v1034_v44  ;;  %vm1096_vm6 = vweird.f32 %v1525_v62  ;;  %v1114_v46 = vand.u32 2147483647, %v2063_v51 }
 0x248   : > { %1528 = vrcp.f32 %v2081_v45  ;;  %v1053_v53 = vsel %vm2359_vm8, %v2260_v43, %v1049_v6  ;;  %v1079_v41 = vadd.f32 %v2292_v56, %v1078_v28  ;;  %v1093_v50 = vmul.f32 %v1525_v62, %v1092_v32 }
 0x249   : > { %v1106_v37 = vmul.f32 %v1527_v40, %v2063_v51  ;;  %v1028_v15 = vsel %vm2284_vm15, %v2262_v39, %v1023_v47  ;;  %v1068_v43 = vsel %vm2372_vm4, %v2269_v30, %v1064_v31  ;;  %vm2585_vm11 = vweird.f32 %v2045_v42 }
 0x24a   : > { %vm2388_vm14 = vmor %vm2585_vm11, %vm1081_vm12  ;;  %v1102_v27 = vor.u32 1.1754944e-38, %v1101_v14  ;;  %v1116_v18 = vand.u32 2147483648, %v2063_v51  ;;  %v1094_v39 = vadd.f32 %v1525_v62, %v1093_v50  ;;  %v1131_v26 = vand.u32 2147483648, %v2081_v45 }
 0x24b   : > { %v1083_v54 = vsel %vm2388_vm14, %v2292_v56, %v1079_v41  ;;  %v1107_v35 = vsub.f32 1.0, %v1106_v37  ;;  %v2400_v30 = vsel %vm2298_vm1, %v2265_v21, %v1038_v33  ;;  %v1058_v42 = vsel %vm2303_vm10, %v2277_v49, %v1053_v53 }
 0x24c   : > { %vm2588_vm15 = vweird.f32 %v2054_v22  ;;  %vm2408_vm2 = vcmp.eq.f32.partialorder %v1114_v46, 8.507059e+37  ;;  %1530 = vrcp.f32 %v2083_v61  ;;  %v2416_v56 = vsel %vm2314_vm3, %v2282_v20, %v1068_v43 }
 0x24d   : > { %vm1097_vm0 = vmor %vm2588_vm15, %vm1096_vm6  ;;  %v1108_v59 = vmul.f32 %v1527_v40, %v1107_v35  ;;  %vm1111_vm1 = vweird.f32 %v1527_v40  ;;  %v1088_v22 = vsel %vm2319_vm13, %v1087_v24, %v1083_v54  ;;  %v1117_v49 = vor.u32 1.1754944e-38, %v1116_v18 }
 0x24e   : > { %v1098_v21 = vsel %vm1097_vm0, %v1525_v62, %v1094_v39  ;;  %v2418_v57 = vpop.eup %1528  ;;  %v1129_v63 = vand.u32 2147483647, %v2081_v45  ;;  %v2423_v44 = vor.u32 1.1754944e-38, %v1131_v26  ;;  %vm1125_vm10 = vweird.f32 %v2081_v45  ;;  %vm1112_vm3 = vmor %vm1110_vm9, %vm1111_vm1 }
 0x24f   : > { %v1103_v38 = vsel %vm2333_vm5, %v1102_v27, %v1098_v21  ;;  %v1109_v6 = vadd.f32 %v1527_v40, %v1108_v59  ;;  %v1121_v20 = vmul.f32 %v2418_v57, %v2081_v45  ;;  %v1144_v62 = vand.u32 2147483647, %v2083_v61 }
 0x250   : > { %vm1126_vm13 = vweird.f32 %v2418_v57  ;;  %v1146_v25 = vand.u32 2147483648, %v2083_v61  ;;  %v1150_v58 = vperm.slane %v2187_v55, 0  ;;  %v1151_v13 = vperm.slane %v2207_v23, 0 }
 0x251   : > { %v1113_v8 = vsel %vm1112_vm3, %v1527_v40, %v1109_v6  ;;  %v1122_v11 = vsub.f32 1.0, %v1121_v20  ;;  %vm1140_vm5 = vweird.f32 %v2083_v61  ;;  %v1153_v31 = vperm.slane %v2234_v48, 0  ;;  %vm2459_vm6 = vmor %vm1125_vm10, %vm1126_vm13 }
 0x252   : > { %v1155_v24 = vperm.slane %v2247_v9, 0  ;;  %v1531_v17 = vpop.eup %1530  ;;  %v1118_v51 = vsel %vm2408_vm2, %v1117_v49, %v1113_v8  ;;  %v1152_v14 = vperm.slane %v2212_v19, 0  ;;  %v1157_v47 = vperm.slane %v1028_v15, 0 }
 0x253   : > { %v1159_v12 = vperm.slane %v1058_v42, 0  ;;  %v1123_v55 = vmul.f32 %v2418_v57, %v1122_v11  ;;  %vm2444_vm9 = vcmp.eq.f32.partialorder %v1129_v63, 8.507059e+37  ;;  %v1136_v28 = vmul.f32 %v1531_v17, %v2083_v61 }
 0x254   : > { %v1154_v48 = vperm.slane %v2238_v7, 0  ;;  %v1156_v9 = vperm.slane %v2254_v29, 0  ;;  %v1158_v32 = vperm.slane %v2400_v30, 0  ;;  %v1161_v40 = vperm.slane %v1088_v22, 0 }
 0x255   : > { %v1163_v33 = vperm.slane %v1118_v51, 0  ;;  %v1182_v34 = vrot.slane %v1151_v13, 4  ;;  %v1124_v19 = vadd.f32 %v2418_v57, %v1123_v55  ;;  %v1137_v46 = vsub.f32 1.0, %v1136_v28 }
 0x256   : > { %v1183_v53 = vrot.slane %v1153_v31, 4  ;;  %v1184_v52 = vrot.slane %v1155_v24, 4  ;;  %vm1141_vm7 = vweird.f32 %v1531_v17  ;;  %v1185_v41 = vrot.slane %v1157_v47, 4 }
 0x257   : > { %v1186_v50 = vrot.slane %v1159_v12, 4  ;;  %v1187_v37 = vrot.slane %v1161_v40, 4  ;;  %v1138_v15 = vmul.f32 %v1531_v17, %v1137_v46  ;;  %v1188_v43 = vrot.slane %v1163_v33, 4  ;;  %vm1142_vm15 = vmor %vm1140_vm5, %vm1141_vm7 }
 0x258   : > { %vm2593_vm12 = vcmask 1043456   ;;  %v1147_v27 = vor.u32 1.1754944e-38, %v1146_v25  ;;  %v1160_v18 = vperm.slane %v2416_v56, 0  ;;  %v1128_v35 = vsel %vm2459_vm6, %v2418_v57, %v1124_v19 }
 0x259   : > { %v1190_v7 = vsel %vm2593_vm12, %v1150_v58, %v1182_v34  ;;  %vm2594_vm8 = vmmov %vm2593_vm12  ;;  %v1139_v26 = vadd.f32 %v1531_v17, %v1138_v15  ;;  %v1162_v30 = vperm.slane %v1103_v38, 0  ;;  %vm1145_vm2 = vcmp.eq.f32.partialorder %v1144_v62, 8.507059e+37 }
 0x25a   : > { %v1191_v29 = vsel %vm2594_vm8, %v1152_v14, %v1183_v53  ;;  %vm2597_vm4 = vmmov %vm2594_vm8  ;;  %v1206_v60 = vmul.f32 %v1190_v7, %v1758_v1  ;;  %v1133_v61 = vsel %vm2444_vm9, %v2423_v44, %v1128_v35 }
 0x25b   : > { %v1192_v54 = vsel %vm2597_vm4, %v1154_v48, %v1184_v52  ;;  %vm2598_vm11 = vmmov %vm2597_vm4  ;;  %v1207_v56 = vmul.f32 %v1191_v29, %v1764_v3  ;;  %v1143_v59 = vsel %vm1142_vm15, %v1531_v17, %v1139_v26  ;;  %v1164_v63 = vperm.slane %v1133_v61, 0 }
 0x25c   : > { %v1193_v39 = vsel %vm2598_vm11, %v1156_v9, %v1185_v41  ;;  %vm2599_vm14 = vmmov %vm2597_vm4  ;;  %v1208_v21 = vmul.f32 %v1192_v54, %v1756_v0  ;;  %v1148_v49 = vsel %vm1145_vm2, %v1147_v27, %v1143_v59  ;;  %1214 = vst [vmem:[%s235_s7] sm:$0xff] %v1206_v60 }
 0x25d   : > { %v1194_v45 = vsel %vm2599_vm14, %v1158_v32, %v1186_v50  ;;  %vm2600_vm0 = vmmov %vm2597_vm4  ;;  %v1209_v22 = vmul.f32 %v1193_v39, %v1761_v2  ;;  %v1165_v0 = vperm.slane %v1148_v49, 0  ;;  %1215 = vst [vmem:[%s235_s7 + $0x8] sm:$0xff] %v1207_v56 }
 0x25e   : > { %v1195_v42 = vsel %vm2600_vm0, %v1160_v18, %v1187_v37  ;;  %vm2601_vm1 = vmmov %vm2600_vm0  ;;  %v1210_v1 = vmul.f32 %v1194_v45, %v1770_v5  ;;  %1216 = vst [vmem:[%s235_s7 + $0x10] sm:$0xff] %v1208_v21 }
 0x25f   : > { %v1196_v57 = vsel %vm2601_vm1, %v1162_v30, %v1188_v43  ;;  %v1211_v3 = vmul.f32 %v1195_v42, %v1780_v16  ;;  %v1189_v38 = vrot.slane %v1165_v0, 4  ;;  %1217 = vst [vmem:[%s235_s7 + $0x18] sm:$0xff] %v1209_v22  ;;  %vm2602_vm10 = vmmov %vm2600_vm0 }
 0x260   : > { %v1212_v2 = vmul.f32 %v1196_v57, %v1768_v4  ;;  %1218 = vst [vmem:[%s235_s7 + $0x20] sm:$0xff] %v1210_v1 }
 0x261   : > { %v1197_v5 = vsel %vm2602_vm10, %v1164_v63, %v1189_v38  ;;  %1219 = vst [vmem:[%s235_s7 + $0x28] sm:$0xff] %v1211_v3 }
 0x262   : > { %v1213_v44 = vmul.f32 %v1197_v5, %v1775_v10  ;;  %1220 = vst [vmem:[%s235_s7 + $0x30] sm:$0xff] %v1212_v2 }
 0x264   : > { %1221 = vst [vmem:[%s235_s7 + $0x38] sm:$0xff] %v1213_v44 }
 0x265   : > { %1589 = shalt.err (!%p1586_p13)
}
 0x266   : > { %s1650_s19 = smov 128   ;;  %s1651_s29 = smov 8  }
 0x267   : > { %1395 = dma.vmem_to_hbm [thread:$0]  (%p1723_p9), %s1239_s8, 1024, %s1241_s9, %s1223_s10, %s1650_s19, %s1650_s19, %s1651_s29  }
 0x268 PF: > { %s1255_s30 = sand.u32 1, %s1624_s12   ;;  %p1402_p0 = pnand %p1363_p12, %p1730_p11 }
 0x269   : > { %s1256_s4 = scalar_lea.sflag [#allocation4], %s1255_s30 }
 0x26a   : > { %p1403_p1 = pneg %p1402_p0 }
 0x26c   : > { %1619 = dma.done.wait (%p1403_p1), %s1256_s4, 1024  }
 0x26d   : > { %1621 = vsyncadd (%p1403_p1), %s1256_s4, 4294966272  ;;  %s19_s17 = sadd.s32 1, %s1644_s17   ;;  %s2603_s12 = smov %s1628_s13 }
 0x26e   : > { %p16_p2 = scmp.ge.s32.totalorder %s19_s17, 4   ;;  %s2604_s13 = smov %s1632_s14 }
 0x26f   : > { %s2605_s14 = smov %s1728_s26  ;;  %s2606_s15 = smov %s1640_s16 }
 0x270   : > { %s2607_s16 = smov %s2609_s20  ;;  %18 = sbr.rel (!%p16_p2) target bundleno = 6 (0x6), region = 89 }
 0x275   :  { %1262 = vsyncpa [#allocation3], 1 }
 0x276   :  { %1264 = vsyncpa [#allocation3 + $0x1], 1 }
 0x277   :  { %1265 = vsyncpa [#allocation4], 1 }
 0x278   :  { %1267 = vsyncpa [#allocation4 + $0x1], 1 }

</bundles_post_ra>
